<compile_context>
chip_gen: v5e
topology: v5e:2x2
jax: 0.10.0
libtpu: 0.0.40
codegen_flags: <defaults>
</compile_context>

<pallas_src>
from functools import partial

import jax
import jax.numpy as jnp
from jax.experimental import pallas as pl
from jax.experimental.pallas import tpu as pltpu

DILATION = 2
PADDING = 2  # must equal dilation so spatial size is preserved (needed for the concat)


def dilated_module_kernel(p_ref, w1t_ref, w2t_ref, w3t_ref, b_ref, o_ref):
    # p_ref : (1, 9*Cin, HW)   im2col patches, channels-major (mxu dtype)
    # w1t   : (Cmid, 9*Cin)    dilated-conv weight, BN1 scale folded in
    # w2t   : (C1,   Cmid)     1x1 conv1 weight,   BN2 scale folded in
    # w3t   : (Cout, Cin+C1)   1x1 conv2 weight,   BN3 scale folded in
    # b_ref : (Cmid+C1+Cout, 1) packed BN biases (f32)
    # o_ref : (1, Cout, HW)
    p = p_ref[0]                         # (9*Cin, HW)
    mxu = p.dtype
    cin = p_ref.shape[1] // 9
    cmid = w1t_ref.shape[0]
    c1 = w2t_ref.shape[0]

    b = b_ref[...]                       # (128, 1) f32
    b1 = b[:cmid]                        # (Cmid, 1)
    b2 = b[cmid:cmid + c1]               # (C1,   1)
    b3 = b[cmid + c1:]                   # (Cout, 1)

    # dilated 3x3 conv: single im2col matmul (K = 9*Cin) + folded BN + ReLU
    y = jnp.dot(w1t_ref[...], p, preferred_element_type=jnp.float32)      # (Cmid, HW)
    y = jnp.maximum(y + b1, 0.0)

    # conv1: 1x1 (Cmid -> C1) + folded BN + ReLU
    y = jnp.dot(w2t_ref[...], y.astype(mxu),
                preferred_element_type=jnp.float32)                        # (C1, HW)
    y = jnp.maximum(y + b2, 0.0)

    # conv2 on concat(x, y): the center tap of the im2col matrix IS x, so the
    # 1x1 matmul is split over the two concat halves (no concat, no extra DMA).
    w3t = w3t_ref[...]                   # (Cout, Cin + C1)
    xc = p[4 * cin:5 * cin, :]           # (Cin, HW)  == x, channels-major
    z = (jnp.dot(w3t[:, :cin], xc, preferred_element_type=jnp.float32)
         + jnp.dot(w3t[:, cin:], y.astype(mxu),
                   preferred_element_type=jnp.float32))                    # (Cout, HW)
    z = jnp.maximum(z + b3, 0.0)

    # lane-dense store: last dim HW = 256 lanes (unmasked vst), already NCHW.
    o_ref[0] = z.astype(o_ref.dtype)


def dilated_module_forward(x_nchw, params, *, dilation=DILATION, padding=PADDING,
                           mxu_dtype=jnp.bfloat16):
    w1, s1, b1, w2, s2, b2, w3, s3, b3 = params
    assert padding == dilation, (
        "DilatedModule kernel requires padding == dilation so the dilated conv "
        "preserves the spatial size (needed for the channel concat)")

    B, Cin, H, W = x_nchw.shape
    Cmid = w1.shape[-1]                  # 64
    C1 = w2.shape[-1]                    # 32
    Cout = w3.shape[-1]                  # 32
    HW = H * W
    d = dilation

    # --- wrapper pre-pass: replicate pad + im2col, channels-major (no transposes) ---
    xp = jnp.pad(x_nchw, ((0, 0), (0, 0), (padding, padding), (padding, padding)),
                 mode="edge")
    taps = [xp[:, :, kh * d:kh * d + H, kw * d:kw * d + W].reshape(B, Cin, HW)
            for kh in range(3) for kw in range(3)]
    patches_t = jnp.concatenate(taps, axis=1).astype(mxu_dtype)   # (B, 9*Cin, HW)

    # --- fold BN scales into weights; pack biases into a single (128, 1) array ---
    w1t = (w1.reshape(9 * Cin, Cmid) * s1).T.astype(mxu_dtype)    # (Cmid, 9*Cin)
    w2t = (w2 * s2).T.astype(mxu_dtype)                           # (C1, Cmid)
    w3t = (w3 * s3).T.astype(mxu_dtype)                           # (Cout, Cin + C1)
    bias = jnp.concatenate([b1, b2, b3], axis=-1).reshape(-1, 1).astype(jnp.float32)

    out = pl.pallas_call(
        dilated_module_kernel,
        out_shape=jax.ShapeDtypeStruct((B, Cout, HW), x_nchw.dtype),
        grid=(B,),
        in_specs=[
            pl.BlockSpec((1, 9 * Cin, HW), lambda b: (b, 0, 0)),   # im2col patches
            pl.BlockSpec((Cmid, 9 * Cin), lambda b: (0, 0)),       # dilated conv W
            pl.BlockSpec((C1, Cmid), lambda b: (0, 0)),            # conv1 W
            pl.BlockSpec((Cout, Cin + C1), lambda b: (0, 0)),      # conv2 W (split in-kernel)
            pl.BlockSpec((Cmid + C1 + Cout, 1), lambda b: (0, 0)),  # packed biases
        ],
        out_specs=pl.BlockSpec((1, Cout, HW), lambda b: (b, 0, 0)),
        compiler_params=pltpu.CompilerParams(dimension_semantics=("parallel",)),
    )(patches_t, w1t, w2t, w3t, bias)

    return out.reshape(B, Cout, H, W)    # free: already channels-first


def make_params(key):
    ks = jax.random.split(key, 17)

    def bn_fold(kg, kb, km, kv, c):
        gamma = 1.0 + 0.1 * jax.random.normal(kg, (c,), jnp.float32)
        beta = 0.1 * jax.random.normal(kb, (c,), jnp.float32)
        mean = 0.1 * jax.random.normal(km, (c,), jnp.float32)
        var = jnp.abs(1.0 + 0.1 * jax.random.normal(kv, (c,), jnp.float32))
        scale = gamma / jnp.sqrt(var + 1e-5)
        bias = beta - mean * scale
        return scale.reshape(1, c), bias.reshape(1, c)

    w1 = 0.1 * jax.random.normal(ks[0], (3, 3, 32, 64), jnp.float32)   # HWIO
    s1, b1 = bn_fold(ks[1], ks[2], ks[3], ks[4], 64)
    w2 = 0.1 * jax.random.normal(ks[5], (64, 32), jnp.float32)
    s2, b2 = bn_fold(ks[6], ks[7], ks[8], ks[9], 32)
    w3 = 0.1 * jax.random.normal(ks[10], (64, 32), jnp.float32)        # rows: [x(32), y(32)]
    s3, b3 = bn_fold(ks[11], ks[12], ks[13], ks[14], 32)
    return (w1, s1, b1, w2, s2, b2, w3, s3, b3)


def reference_forward(x_nchw, params, *, dilation=DILATION, padding=PADDING):
    # Pure-JAX reference (same math as the PyTorch module, inference-mode BN).
    # Concat order matches torch.cat((x, y), 1): x first, then y.
    w1, s1, b1, w2, s2, b2, w3, s3, b3 = params
    x = jnp.transpose(x_nchw, (0, 2, 3, 1))
    xp = jnp.pad(x, ((0, 0), (padding, padding), (padding, padding), (0, 0)),
                 mode="edge")
    y = jax.lax.conv_general_dilated(
        xp, w1, window_strides=(1, 1), padding="VALID",
        rhs_dilation=(dilation, dilation),
        dimension_numbers=("NHWC", "HWIO", "NHWC"))
    y = jnp.maximum(y * s1 + b1, 0.0)
    y = jnp.einsum("bhwc,co->bhwo", y, w2)
    y = jnp.maximum(y * s2 + b2, 0.0)
    z = jnp.concatenate([x, y], axis=-1)
    z = jnp.einsum("bhwc,co->bhwo", z, w3)
    z = jnp.maximum(z * s3 + b3, 0.0)
    return jnp.transpose(z, (0, 3, 1, 2))


if __name__ == "__main__":
    key = jax.random.PRNGKey(0)
    kx, kp = jax.random.split(key)
    x = jax.random.normal(kx, (2, 32, 16, 16), jnp.float32)   # NCHW, like PyTorch
    params = make_params(kp)

    ref = reference_forward(x, params)

    # f32 MXU path: tight check against the pure-JAX reference.
    out_f32 = jax.block_until_ready(
        dilated_module_forward(x, params, mxu_dtype=jnp.float32))
    assert out_f32.shape == (2, 32, 16, 16)
    assert jnp.allclose(out_f32, ref, rtol=1e-4, atol=1e-4), "f32 mismatch vs reference"

    # bf16 MXU path (v6e / v7x fast path): loose numerical check.
    out_bf16 = jax.block_until_ready(
        dilated_module_forward(x, params, mxu_dtype=jnp.bfloat16))
    assert out_bf16.shape == (2, 32, 16, 16)
    assert jnp.allclose(out_bf16, ref, rtol=1e-1, atol=1e-1), "bf16 mismatch vs reference"

    print("KERNEL_OK")
</pallas_src>

<mosaic_0001>
module attributes {stable_mosaic.version = 11 : i64} {
  func.func @dilated_module_kernel(%arg0: i32, %arg1: memref<1x288x256xf32, #tpu.memory_space<vmem>>, %arg2: memref<64x288xf32, #tpu.memory_space<vmem>>, %arg3: memref<32x64xf32, #tpu.memory_space<vmem>>, %arg4: memref<32x64xf32, #tpu.memory_space<vmem>>, %arg5: memref<128x1xf32, #tpu.memory_space<vmem>>, %arg6: memref<1x32x256xf32, #tpu.memory_space<vmem>>) attributes {dimension_semantics = [#tpu.dimension_semantics<parallel>], iteration_bounds = array<i64: 2>, scalar_prefetch = 0 : i64, scratch_operands = 0 : i64, tpu.core_type = #tpu.core_type<tc>, window_params = [{transform_indices = @transform_0, window_bounds = array<i64: 1, 288, 256>}, {pipeline_mode = #tpu.pipeline_mode<synchronous>, transform_indices = @transform_1, window_bounds = array<i64: 64, 288>}, {pipeline_mode = #tpu.pipeline_mode<synchronous>, transform_indices = @transform_2, window_bounds = array<i64: 32, 64>}, {pipeline_mode = #tpu.pipeline_mode<synchronous>, transform_indices = @transform_3, window_bounds = array<i64: 32, 64>}, {pipeline_mode = #tpu.pipeline_mode<synchronous>, transform_indices = @transform_4, window_bounds = array<i64: 128, 1>}, {transform_indices = @transform_5, window_bounds = array<i64: 1, 32, 256>}]} {
    %c0 = arith.constant 0 : index
    %c0_0 = arith.constant 0 : index
    %c0_1 = arith.constant 0 : index
    %0 = vector.load %arg1[%c0, %c0_0, %c0_1] : memref<1x288x256xf32, #tpu.memory_space<vmem>>, vector<1x288x256xf32>
    %1 = vector.shape_cast %0 : vector<1x288x256xf32> to vector<288x256xf32>
    %c0_2 = arith.constant 0 : index
    %c0_3 = arith.constant 0 : index
    %2 = vector.load %arg5[%c0_2, %c0_3] : memref<128x1xf32, #tpu.memory_space<vmem>>, vector<128x1xf32>
    %3 = vector.extract_strided_slice %2 {offsets = [0, 0], sizes = [64, 1], strides = [1, 1]} : vector<128x1xf32> to vector<64x1xf32>
    %4 = vector.extract_strided_slice %2 {offsets = [64, 0], sizes = [32, 1], strides = [1, 1]} : vector<128x1xf32> to vector<32x1xf32>
    %5 = vector.extract_strided_slice %2 {offsets = [96, 0], sizes = [32, 1], strides = [1, 1]} : vector<128x1xf32> to vector<32x1xf32>
    %c0_4 = arith.constant 0 : index
    %c0_5 = arith.constant 0 : index
    %6 = vector.load %arg2[%c0_4, %c0_5] : memref<64x288xf32, #tpu.memory_space<vmem>>, vector<64x288xf32>
    %cst = arith.constant dense<0.000000e+00> : vector<64x256xf32>
    %7 = tpu.matmul %6, %1, %cst {dimension_numbers = #tpu.dot_dimension_numbers<[1], [0], [0], [1], [0, 0, 1, 1], [], []>} : vector<64x288xf32>, vector<288x256xf32>, vector<64x256xf32> -> vector<64x256xf32>
    %8 = vector.broadcast %3 : vector<64x1xf32> to vector<64x256xf32>
    %9 = arith.addf %7, %8 : vector<64x256xf32>
    %cst_6 = arith.constant 0.000000e+00 : f32
    %10 = vector.broadcast %cst_6 : f32 to vector<64x256xf32>
    %11 = arith.maximumf %9, %10 : vector<64x256xf32>
    %c0_7 = arith.constant 0 : index
    %c0_8 = arith.constant 0 : index
    %12 = vector.load %arg3[%c0_7, %c0_8] : memref<32x64xf32, #tpu.memory_space<vmem>>, vector<32x64xf32>
    %cst_9 = arith.constant dense<0.000000e+00> : vector<32x256xf32>
    %13 = tpu.matmul %12, %11, %cst_9 {dimension_numbers = #tpu.dot_dimension_numbers<[1], [0], [0], [1], [0, 0, 1, 1], [], []>} : vector<32x64xf32>, vector<64x256xf32>, vector<32x256xf32> -> vector<32x256xf32>
    %14 = vector.broadcast %4 : vector<32x1xf32> to vector<32x256xf32>
    %15 = arith.addf %13, %14 : vector<32x256xf32>
    %cst_10 = arith.constant 0.000000e+00 : f32
    %16 = vector.broadcast %cst_10 : f32 to vector<32x256xf32>
    %17 = arith.maximumf %15, %16 : vector<32x256xf32>
    %c0_11 = arith.constant 0 : index
    %c0_12 = arith.constant 0 : index
    %18 = vector.load %arg4[%c0_11, %c0_12] : memref<32x64xf32, #tpu.memory_space<vmem>>, vector<32x64xf32>
    %19 = vector.extract_strided_slice %1 {offsets = [128, 0], sizes = [32, 256], strides = [1, 1]} : vector<288x256xf32> to vector<32x256xf32>
    %20 = vector.extract_strided_slice %18 {offsets = [0, 0], sizes = [32, 32], strides = [1, 1]} : vector<32x64xf32> to vector<32x32xf32>
    %cst_13 = arith.constant dense<0.000000e+00> : vector<32x256xf32>
    %21 = tpu.matmul %20, %19, %cst_13 {dimension_numbers = #tpu.dot_dimension_numbers<[1], [0], [0], [1], [0, 0, 1, 1], [], []>} : vector<32x32xf32>, vector<32x256xf32>, vector<32x256xf32> -> vector<32x256xf32>
    %22 = vector.extract_strided_slice %18 {offsets = [0, 32], sizes = [32, 32], strides = [1, 1]} : vector<32x64xf32> to vector<32x32xf32>
    %cst_14 = arith.constant dense<0.000000e+00> : vector<32x256xf32>
    %23 = tpu.matmul %22, %17, %cst_14 {dimension_numbers = #tpu.dot_dimension_numbers<[1], [0], [0], [1], [0, 0, 1, 1], [], []>} : vector<32x32xf32>, vector<32x256xf32>, vector<32x256xf32> -> vector<32x256xf32>
    %24 = arith.addf %21, %23 : vector<32x256xf32>
    %25 = vector.broadcast %5 : vector<32x1xf32> to vector<32x256xf32>
    %26 = arith.addf %24, %25 : vector<32x256xf32>
    %cst_15 = arith.constant 0.000000e+00 : f32
    %27 = vector.broadcast %cst_15 : f32 to vector<32x256xf32>
    %28 = arith.maximumf %26, %27 : vector<32x256xf32>
    %c0_16 = arith.constant 0 : index
    %c0_17 = arith.constant 0 : index
    %c0_18 = arith.constant 0 : index
    %29 = vector.load %arg6[%c0_16, %c0_17, %c0_18] : memref<1x32x256xf32, #tpu.memory_space<vmem>>, vector<1x32x256xf32>
    %30 = vector.shape_cast %29 : vector<1x32x256xf32> to vector<32x256xf32>
    %31 = vector.shape_cast %28 : vector<32x256xf32> to vector<1x32x256xf32>
    tpu.vector_store %arg6[%c0_16, %c0_17, %c0_18], %31 {strides = array<i32>} : memref<1x32x256xf32, #tpu.memory_space<vmem>>, vector<1x32x256xf32>,
    return
  }
  func.func @transform_0(%arg0: i32) -> (i32, i32, i32) {
    %c0_i32 = arith.constant 0 : i32
    %c0_i32_0 = arith.constant 0 : i32
    %c0_i32_1 = arith.constant 0 : i32
    return %arg0, %c0_i32, %c0_i32_0 : i32, i32, i32
  }
  func.func @transform_1(%arg0: i32) -> (i32, i32) {
    %c0_i32 = arith.constant 0 : i32
    %c0_i32_0 = arith.constant 0 : i32
    %c0_i32_1 = arith.constant 0 : i32
    return %c0_i32, %c0_i32_0 : i32, i32
  }
  func.func @transform_2(%arg0: i32) -> (i32, i32) {
    %c0_i32 = arith.constant 0 : i32
    %c0_i32_0 = arith.constant 0 : i32
    %c0_i32_1 = arith.constant 0 : i32
    return %c0_i32, %c0_i32_0 : i32, i32
  }
  func.func @transform_3(%arg0: i32) -> (i32, i32) {
    %c0_i32 = arith.constant 0 : i32
    %c0_i32_0 = arith.constant 0 : i32
    %c0_i32_1 = arith.constant 0 : i32
    return %c0_i32, %c0_i32_0 : i32, i32
  }
  func.func @transform_4(%arg0: i32) -> (i32, i32) {
    %c0_i32 = arith.constant 0 : i32
    %c0_i32_0 = arith.constant 0 : i32
    %c0_i32_1 = arith.constant 0 : i32
    return %c0_i32, %c0_i32_0 : i32, i32
  }
  func.func @transform_5(%arg0: i32) -> (i32, i32, i32) {
    %c0_i32 = arith.constant 0 : i32
    %c0_i32_0 = arith.constant 0 : i32
    %c0_i32_1 = arith.constant 0 : i32
    return %arg0, %c0_i32, %c0_i32_0 : i32, i32, i32
  }
}

</mosaic_0001>

<bundles_post_ra>
// kernel: tpu_custom_call.1
= control target key start
LH: loop header
LB: loop body
LE: loop exit
PB: predicated region body
PF: predicated region fallthrough
CT: control target
= control target key end

     0   :  { %s1857_s0 = inlined_call_operand.hbm [shape: f32[2,288,256], index: 0, kind: input, shape index: {}]   ;;  %s1858_s1 = inlined_call_operand.hbm [shape: f32[64,288], index: 1, kind: input, shape index: {}]   ;;  %s1859_s2 = inlined_call_operand.vmem [shape: f32[32,64], index: 2, kind: input, shape index: {}]   ;;  %s1860_s3 = inlined_call_operand.vmem [shape: f32[32,64], index: 3, kind: input, shape index: {}]   ;;  %s1861_s4 = inlined_call_operand.vmem [shape: f32[128,1], index: 4, kind: input, shape index: {}]   ;;  %s1862_s5 = inlined_call_operand.hbm [shape: f32[2,32,256], index: 5, kind: output, shape index: {}]  }
   0x1   :  { %1863 = sst [smem:[#allocation11_spill]] %s1858_s1 }
   0x2   :  { %10 = vsyncpa [#allocation3], 0 }
   0x3   :  { %12 = vsyncpa [#allocation3 + $0x1], 0 }
   0x4   :  { %13 = vsyncpa [#allocation6], 0 }
   0x5   :  { %14 = vsyncpa [#allocation4], 0 }
   0x6   :  { %16 = vsyncpa [#allocation4 + $0x1], 0  ;;  %s1395_s18 = smov 0   ;;  %s1397_s19 = smov 0  }
   0x7   :  { %s1399_s20 = smov 0   ;;  %s1401_s21 = smov 0  }
   0x8 LB: > { %s1416_s22 = sadd.s32 4294967295, %s1354_s21   ;;  %s1095_s23 = sadd.s32 4294967294, %s1354_s21   ;;  %s1354_s21 = sphi %s1401_s21, %s1874_s21   ;;  %s1350_s20 = sphi %s1399_s20, %s1873_s20   ;;  %s1346_s19 = sphi %s1397_s19, %s1872_s19   ;;  %s1342_s18 = sphi %s1395_s18, %s1871_s18  }
   0x9   : > { %p42_p0 = scmp.ne.s32.totalorder %s1346_s19, %s1342_s18  ;;  %p43_p1 = scmp.eq.s32.totalorder %s1416_s22, 0 }
   0xa   : > { %p150_p2 = scmp.eq.s32.totalorder %s1416_s22, 1  ;;  %p156_p3 = scmp.eq.s32.totalorder %s1095_s23, 1 }
   0xb   : > { %p1425_p4 = por %p43_p1, %p42_p0  ;;  %p1096_p5 = scmp.ge.s32.totalorder %s1354_s21, 1 }
   0xc   : > { %p1430_p6 = por %p156_p3, %p42_p0  ;;  %p163_p7 = scmp.lt.s32.totalorder %s1354_s21, 3 }
   0xd   : > { %s1866_s1 = sld [smem:[#allocation11_spill]]  ;;  %s1356_s30 = smov [#allocation5]  }
   0xe   : > { %p1438_p8 = pnand %p1096_p5, %p163_p7  ;;  %s176_s6 = sshll.u32 %s1356_s30, 4  ;;  %s177_s6 = int_to_ptr.vmem [resolvable:$true] %s176_s6 }
   0xf   : > { %s1448_s7 = sadd.s32 1, %s1354_s21   ;;  %s1357_s8 = smov 384  }
  0x10   : > { %p1164_p9 = pneg %p1438_p8  ;;  %s1358_s9 = smov 24  }
  0x11   : > { %s26_s10 = ssub.s32 %s1354_s21, %s1448_s7  ;;  %s29_s11 = sadd.s32 1, %s1350_s20 }
  0x12   : > { %p1165_p10 = pnand %p1164_p9, %p43_p1  ;;  %p27_p12 = scmp.eq.s32.totalorder %s26_s10, 0 }
  0x13   : > { %s174_s28 = sshll.u32 %s1866_s1, 4  ;;  %p36_p13 = scmp.ne.s32.totalorder %s1350_s20, %s1346_s19  ;;  %s175_s28 = int_to_ptr.hbm [resolvable:$true] %s174_s28 }
  0x14   : > { %1167 = dma.hbm_to_vmem [thread:$0]  (!%p1165_p10), %s175_s28, 3072, %s177_s6, [#allocation6], %s1357_s8, %s1357_s8, %s1358_s9  }
  0x15   : > { %p37_p0 = scmp.eq.s32.totalorder %s1354_s21, 0  ;;  %p1177_p3 = scmp.lt.s32.totalorder %s1354_s21, 2 }
  0x16   : > { %s1458_s12 = scalar_select %p27_p12, %s1350_s20, %s29_s11  }
  0x17   : > { %p38_p5 = por %p37_p0, %p36_p13  ;;  %p1462_p7 = por %p150_p2, %p36_p13 }
  0x18   : > { %s199_s14 = sand.u32 1, %s1350_s20   ;;  %s1154_s15 = smul.u32 576, %s1354_s21 }
  0x19   : > { %s1153_s16 = smul.u32 576, %s199_s14  ;;  %p1471_p9 = pnand %p1177_p3, %p38_p5 }
  0x1a   : > { %s208_s26 = scalar_lea.hbm %s1857_s0, %s1154_s15  ;;  %s200_s8 = scalar_lea.sflag [#allocation3], %s199_s14 }
  0x1b   : > { %s209_s28 = sshll.u32 %s208_s26, 4  ;;  %s203_s30 = scalar_lea.vmem [#allocation2], %s1153_s16  ;;  %s210_s28 = int_to_ptr.hbm [resolvable:$true] %s209_s28 }
  0x1c   : > { %s211_s6 = sshll.u32 %s203_s30, 4  ;;  %s1254_s9 = sshra.s32 %s210_s28, 4  ;;  %s212_s6 = int_to_ptr.vmem [resolvable:$true] %s211_s6  ;;  %s1255_s9 = int_to_ptr.hbm [resolvable:$true] %s1254_s9 }
  0x1d   : > { %s1256_s10 = scalar_lea.hbm %s1255_s9, 576  ;;  %p1258_p10 = pneg %p1471_p9 }
  0x1e   : > { %p1257_p2 = scmp.ne.s32.totalorder %s1255_s9, %s1256_s10  ;;  %s1261_s17 = scalar_lea.hbm %s1857_s0, 1152 }
  0x1f   : > { %p1262_p0 = scmp.lt.s32.totalorder %s1255_s9, %s1857_s0  ;;  %p1263_p3 = scmp.lt.s32.totalorder %s1261_s17, %s1256_s10 }
  0x20   : > { %p1259_p12 = pnand %p1258_p10, %p1257_p2 }
  0x21   : > { %p1264_p5 = por %p1263_p3, %p1262_p0 }
  0x22   : > { %p1260_p13 = pneg %p1259_p12 }
  0x24   : > { %p1265_p11 = pnand %p1264_p5, %p1260_p13 }
  0x26   : > { %1268 = shalt.err (!%p1265_p11)
}
  0x27   : > { %s1359_s14 = smov 256   ;;  %s1360_s16 = smov 16  }
  0x28   : > { %1171 = dma.hbm_to_vmem [thread:$0]  (!%p1471_p9), %s210_s28, 9216, %s212_s6, %s200_s8, %s1359_s14, %s1359_s14, %s1360_s16  }
  0x29   : > { %223 = sbr.rel (%p1438_p8) target bundleno = 665 (0x299), region = 40  ;;  %s1488_s26 = sand.u32 (!%p1438_p8), 1, %s1346_s19  }
  0x2a   : > { %s1155_s1 = smul.u32 (!%p1438_p8), 576, %s1488_s26  ;;  %s226_s30 = scalar_lea.sflag (!%p1438_p8), [#allocation3], %s1488_s26 }
  0x2c   : > { %s1492_s9 = scalar_lea.vmem (!%p1438_p8), [#allocation2], %s1155_s1 }
  0x2e   : > { %1329 = dma.done.wait (%p1425_p4), %s226_s30, 9216  }
  0x2f   : > { %1331 = vsyncadd (%p1425_p4), %s226_s30, 4294958080 }
  0x30   : > { %1333 = dma.done.wait (%p43_p1), [#allocation6], 3072  }
  0x31   : > { %1335 = vsyncadd (%p43_p1), [#allocation6], 4294964224  ;;  %v1361_v0 = vmov 0   ;;  %v292_v1 = vld [vmem:[%s1492_s9 + $0xf0] sm:$0xff]  ;;  %v290_v3 = vld [vmem:[%s1492_s9 + $0xe0] sm:$0xff]  ;;  %vm414_vm0 = vcmask 261120  }
  0x32   : > { %1222 = vset.pattern.permute.xlu1 %v1361_v0  ;;  %1221 = vset.pattern.permute.xlu0 %v1361_v0  ;;  %v332_v2 = vld [vmem:[%s1492_s9 + $0x230] sm:$0xff]  ;;  %v330_v5 = vld [vmem:[%s1492_s9 + $0x220] sm:$0xff]  ;;  %v339_v19 = vld [vmem:[%s1861_s4 + $0x28] sm:$0xff]  ;;  %s1362_s10 = smov 96   ;;  %vm725_vm1 = vcmask 523264   ;;  %s1102_s29 = sshll.u32 %s1488_s26, 6 }
  0x33   : > { %1223 = vset.pattern.permute.xlu2 %v1361_v0  ;;  %439 = vmatpush.msra.mxu0 %v292_v1  ;;  %v324_v4 = vld [vmem:[%s1492_s9 + $0x1f0] sm:$0xff]  ;;  %v322_v7 = vld [vmem:[%s1492_s9 + $0x1e0] sm:$0xff]  ;;  %v1528_v22 = vld [vmem:[#allocation5 + $0x28] sm:$0xff]  ;;  %s1813_s27 = scalar_lea.vmem [#allocation7], %s1102_s29  ;;  %s1148_s28 = sshll.u32 %s1416_s22, 6 }
  0x34   : > { %533 = vmatpush.msra.mxu2 %v332_v2  ;;  %480 = vmatpush.msra.mxu1 %v324_v4  ;;  %v288_v6 = vld [vmem:[%s1492_s9 + $0xd0] sm:$0xff]  ;;  %v286_v10 = vld [vmem:[%s1492_s9 + $0xc0] sm:$0xff]  ;;  %v341_v25 = vld [vmem:[%s1861_s4 + $0x38] sm:$0xff]  ;;  %s1008_s11 = scalar_lea.hbm %s1862_s5, %s1148_s28  ;;  %s1009_s15 = sshll.u32 %s1813_s27, 4  ;;  %s1010_s15 = int_to_ptr.vmem [resolvable:$true] %s1009_s15 }
  0x35   : > { %v328_v8 = vld [vmem:[%s1492_s9 + $0x210] sm:$0xff]  ;;  %440 = vmatpush.msra.mxu0 %v290_v3  ;;  %v326_v11 = vld [vmem:[%s1492_s9 + $0x200] sm:$0xff]  ;;  %401 = vperm.xlu1 %1222, %v339_v19   ;;  %v293_v27 = vld [vmem:[%s1492_s9 + $0xf8] sm:$0xff]  ;;  %s1011_s17 = sshll.u32 %s1008_s11, 4  ;;  %s1304_s1 = scalar_lea.hbm %s1862_s5, 128  ;;  %s1012_s17 = int_to_ptr.hbm [resolvable:$true] %s1011_s17 }
  0x36   : > { %534 = vmatpush.msra.mxu2 %v330_v5  ;;  %v320_v9 = vld [vmem:[%s1492_s9 + $0x1d0] sm:$0xff]  ;;  %481 = vmatpush.msra.mxu1 %v322_v7  ;;  %v318_v13 = vld [vmem:[%s1492_s9 + $0x1c0] sm:$0xff]  ;;  %v325_v30 = vld [vmem:[%s1492_s9 + $0x1f8] sm:$0xff]  ;;  %s1298_s23 = sshra.s32 %s1012_s17, 4  ;;  %s1299_s23 = int_to_ptr.hbm [resolvable:$true] %s1298_s23 }
  0x37   : > { %441 = vmatpush.msra.mxu0 %v288_v6  ;;  %v1513_v12 = vld [vmem:[#allocation5 + $0x10] sm:$0xff]  ;;  %v282_v16 = vld [vmem:[%s1492_s9 + $0xa0] sm:$0xff]  ;;  %411 = vperm.xlu0 %1221, %v341_v25   ;;  %v291_v32 = vld [vmem:[%s1492_s9 + $0xe8] sm:$0xff]  ;;  %s1300_s22 = scalar_lea.hbm %s1299_s23, 64  ;;  %p1305_p11 = scmp.lt.s32.totalorder %s1299_s23, %s1862_s5 }
  0x38   : > { %535 = vmatpush.msra.mxu2 %v328_v8  ;;  %482 = vmatpush.msra.mxu1 %v320_v9  ;;  %v284_v14 = vld [vmem:[%s1492_s9 + $0xb0] sm:$0xff]  ;;  %v314_v17 = vld [vmem:[%s1492_s9 + $0x1a0] sm:$0xff]  ;;  %v323_v34 = vld [vmem:[%s1492_s9 + $0x1e8] sm:$0xff]  ;;  %p1301_p1 = scmp.ne.s32.totalorder %s1299_s23, %s1300_s22  ;;  %p1306_p9 = scmp.lt.s32.totalorder %s1304_s1, %s1300_s22 }
  0x39   : > { %442 = vmatpush.msra.mxu0 %v286_v10  ;;  %v316_v15 = vld [vmem:[%s1492_s9 + $0x1b0] sm:$0xff]  ;;  %v278_v21 = vld [vmem:[%s1492_s9 + $0x80] sm:$0xff]  ;;  %562 = vmatpush.msra.mxu3 %v293_v27  ;;  %v289_v36 = vld [vmem:[%s1492_s9 + $0xd8] sm:$0xff] }
  0x3a   : > { %536 = vmatpush.msra.mxu2 %v326_v11  ;;  %483 = vmatpush.msra.mxu1 %v318_v13  ;;  %v280_v18 = vld [vmem:[%s1492_s9 + $0x90] sm:$0xff]  ;;  %v310_v23 = vld [vmem:[%s1492_s9 + $0x180] sm:$0xff]  ;;  %v287_v42 = vld [vmem:[%s1492_s9 + $0xc8] sm:$0xff]  ;;  %p1302_p4 = pnand %p1301_p1, %p1462_p7  ;;  %p1307_p2 = por %p1306_p9, %p1305_p11 }
  0x3b   : > { %1103 = vmatmul.msk.f32.vlgmr.msra.gmra.mxu2 %vm414_vm0, %v1513_v12  ;;  %443 = vmatpush.msra.mxu0 %v284_v14  ;;  %v312_v20 = vld [vmem:[%s1492_s9 + $0x190] sm:$0xff]  ;;  %v274_v28 = vld [vmem:[%s1492_s9 + $0x60] sm:$0xff]  ;;  %v321_v44 = vld [vmem:[%s1492_s9 + $0x1d8] sm:$0xff] }
  0x3c   : > { %484 = vmatpush.msra.mxu1 %v316_v15  ;;  %v276_v24 = vld [vmem:[%s1492_s9 + $0x70] sm:$0xff]  ;;  %v338_v29 = vld [vmem:[%s1861_s4 + $0x20] sm:$0xff]  ;;  %603 = vmatpush.msrb.mxu2 %v325_v30  ;;  %v285_v48 = vld [vmem:[%s1492_s9 + $0xb8] sm:$0xff]  ;;  %p1303_p8 = pneg %p1302_p4 }
  0x3d   : > { %444 = vmatpush.msra.mxu0 %v282_v16  ;;  %v308_v26 = vld [vmem:[%s1492_s9 + $0x170] sm:$0xff]  ;;  %v306_v31 = vld [vmem:[%s1492_s9 + $0x160] sm:$0xff]  ;;  %396 = vperm.xlu1 %1222, %v338_v29   ;;  %v319_v50 = vld [vmem:[%s1492_s9 + $0x1c8] sm:$0xff] }
  0x3e   : > { %485 = vmatpush.msra.mxu1 %v314_v17  ;;  %v272_v33 = vld [vmem:[%s1492_s9 + $0x50] sm:$0xff]  ;;  %v270_v37 = vld [vmem:[%s1492_s9 + $0x40] sm:$0xff]  ;;  %563 = vmatpush.msra.mxu3 %v291_v32  ;;  %v283_v52 = vld [vmem:[%s1492_s9 + $0xa8] sm:$0xff]  ;;  %p1308_p10 = pnand %p1307_p2, %p1303_p8 }
  0x3f   : > { %445 = vmatpush.msra.mxu0 %v280_v18  ;;  %v304_v35 = vld [vmem:[%s1492_s9 + $0x150] sm:$0xff]  ;;  %v1554_v39 = vld [vmem:[#allocation5 + $0x40] sm:$0xff]  ;;  %604 = vmatpush.msrb.mxu2 %v323_v34  ;;  %v317_v54 = vld [vmem:[%s1492_s9 + $0x1b8] sm:$0xff] }
  0x40   : > { %486 = vmatpush.msra.mxu1 %v312_v20  ;;  %v340_v38 = vld [vmem:[%s1861_s4 + $0x30] sm:$0xff]  ;;  %v302_v40 = vld [vmem:[%s1492_s9 + $0x140] sm:$0xff]  ;;  %564 = vmatpush.msra.mxu3 %v289_v36  ;;  %v1585_v56 = vld [vmem:[#allocation5 + $0x58] sm:$0xff] }
  0x41   : > { %446 = vmatpush.msra.mxu0 %v278_v21  ;;  %v268_v41 = vld [vmem:[%s1492_s9 + $0x30] sm:$0xff]  ;;  %406 = vperm.xlu0 %1221, %v340_v38   ;;  %v266_v45 = vld [vmem:[%s1492_s9 + $0x20] sm:$0xff]  ;;  %v335_v58 = vld [vmem:[%s1861_s4 + $0x8] sm:$0xff] }
  0x42   : > { %487 = vmatpush.msra.mxu1 %v310_v23  ;;  %v1560_v43 = vld [vmem:[%s1492_s9 + $0x130] sm:$0xff]  ;;  %v334_v46 = vld [vmem:[%s1861_s4] sm:$0xff]  ;;  %565 = vmatpush.msra.mxu3 %v287_v42  ;;  %v1594_v59 = vld [vmem:[#allocation5 + $0x8] sm:$0xff] }
  0x43   : > { %1104 = vmatmul.msk.f32.gmra.mxu2 %vm414_vm0, %v1528_v22  ;;  %447 = vmatpush.msra.mxu0 %v276_v24  ;;  %v1570_v47 = vld [vmem:[%s1492_s9 + $0x120] sm:$0xff]  ;;  %v264_v49 = vld [vmem:[%s1492_s9 + $0x10] sm:$0xff]  ;;  %v281_v60 = vld [vmem:[%s1492_s9 + $0x98] sm:$0xff] }
  0x44   : > { %488 = vmatpush.msra.mxu1 %v308_v26  ;;  %605 = vmatpush.msrb.mxu2 %v321_v44  ;;  %v1577_v51 = vld [vmem:[%s1492_s9 + $0x110] sm:$0xff]  ;;  %v262_v53 = vld [vmem:[%s1492_s9] sm:$0xff]  ;;  %v315_v61 = vld [vmem:[%s1492_s9 + $0x1a8] sm:$0xff] }
  0x45   : > { %448 = vmatpush.msra.mxu0 %v274_v28  ;;  %376 = vperm.xlu1 %1222, %v334_v46   ;;  %v1583_v55 = vld [vmem:[#allocation5] sm:$0xff]  ;;  %v279_v62 = vld [vmem:[%s1492_s9 + $0x88] sm:$0xff]  ;;  %v313_v63 = vld [vmem:[%s1492_s9 + $0x198] sm:$0xff] }
  0x46   : > { %489 = vmatpush.msra.mxu1 %v306_v31  ;;  %566 = vmatpush.msra.mxu3 %v285_v48  ;;  %v1589_v57 = vld [vmem:[%s1492_s9 + $0x100] sm:$0xff]  ;;  %v277_v0 = vld [vmem:[%s1492_s9 + $0x78] sm:$0xff]  ;;  %v311_v1 = vld [vmem:[%s1492_s9 + $0x188] sm:$0xff] }
  0x47   : > { %449 = vmatpush.msra.mxu0 %v272_v33  ;;  %606 = vmatpush.msrb.mxu2 %v319_v50  ;;  %v1607_v2 = vld [vmem:[#allocation5 + $0x18] sm:$0xff]  ;;  %v1609_v3 = vld [vmem:[#allocation5 + $0x70] sm:$0xff]  ;;  %v275_v4 = vld [vmem:[%s1492_s9 + $0x68] sm:$0xff] }
  0x48   : > { %490 = vmatpush.msra.mxu1 %v304_v35  ;;  %567 = vmatpush.msra.mxu3 %v283_v52  ;;  %v309_v5 = vld [vmem:[%s1492_s9 + $0x178] sm:$0xff]  ;;  %v1613_v6 = vld [vmem:[#allocation5 + $0x20] sm:$0xff]  ;;  %v307_v8 = vld [vmem:[%s1492_s9 + $0x168] sm:$0xff] }
  0x49   : > { %450 = vmatpush.msra.mxu0 %v270_v37  ;;  %607 = vmatpush.msrb.mxu2 %v317_v54  ;;  %v273_v7 = vld [vmem:[%s1492_s9 + $0x58] sm:$0xff]  ;;  %v271_v9 = vld [vmem:[%s1492_s9 + $0x48] sm:$0xff]  ;;  %v356_v15 = vld [vmem:[#allocation5 + $0x30] sm:$0xff] }
  0x4a   : > { %491 = vmatpush.msra.mxu1 %v302_v40  ;;  %381 = vperm.xlu0 %1221, %v335_v58   ;;  %v305_v10 = vld [vmem:[%s1492_s9 + $0x158] sm:$0xff]  ;;  %v303_v14 = vld [vmem:[%s1492_s9 + $0x148] sm:$0xff]  ;;  %v336_v25 = vld [vmem:[%s1861_s4 + $0x10] sm:$0xff] }
  0x4b   : > { %1105 = vmatmul.msk.f32.gmra.mxu2 %vm414_vm0, %v1554_v39  ;;  %451 = vmatpush.msra.mxu0 %v268_v41  ;;  %v337_v11 = vld [vmem:[%s1861_s4 + $0x18] sm:$0xff]  ;;  %v1628_v16 = vld [vmem:[#allocation5 + $0x88] sm:$0xff]  ;;  %v1646_v29 = vld [vmem:[#allocation5 + $0xa0] sm:$0xff] }
  0x4c   : > { %492 = vmatpush.msra.mxu1 %v1560_v43  ;;  %568 = vmatpush.msra.mxu3 %v281_v60  ;;  %v269_v13 = vld [vmem:[%s1492_s9 + $0x38] sm:$0xff]  ;;  %v267_v17 = vld [vmem:[%s1492_s9 + $0x28] sm:$0xff]  ;;  %v360_v30 = vld [vmem:[#allocation5 + $0x50] sm:$0xff] }
  0x4d   : > { %452 = vmatpush.msra.mxu0 %v266_v45  ;;  %608 = vmatpush.msrb.mxu2 %v315_v61  ;;  %v301_v18 = vld [vmem:[%s1492_s9 + $0x138] sm:$0xff]  ;;  %v299_v21 = vld [vmem:[%s1492_s9 + $0x128] sm:$0xff]  ;;  %v362_v34 = vld [vmem:[#allocation5 + $0x60] sm:$0xff] }
  0x4e   : > { %493 = vmatpush.msra.mxu1 %v1570_v47  ;;  %569 = vmatpush.msra.mxu3 %v279_v62  ;;  %v1632_v19 = vld [vmem:[#allocation5 + $0x38] sm:$0xff]  ;;  %v263_v23 = vld [vmem:[%s1492_s9 + $0x8] sm:$0xff]  ;;  %v366_v38 = vld [vmem:[#allocation5 + $0x80] sm:$0xff] }
  0x4f   : > { %453 = vmatpush.msra.mxu0 %v264_v49  ;;  %609 = vmatpush.msrb.mxu2 %v313_v63  ;;  %v265_v20 = vld [vmem:[%s1492_s9 + $0x18] sm:$0xff]  ;;  %v295_v27 = vld [vmem:[%s1492_s9 + $0x108] sm:$0xff]  ;;  %v368_v40 = vld [vmem:[#allocation5 + $0x90] sm:$0xff] }
  0x50   : > { %494 = vmatpush.msra.mxu1 %v1577_v51  ;;  %570 = vmatpush.msra.mxu3 %v277_v0  ;;  %v297_v24 = vld [vmem:[%s1492_s9 + $0x118] sm:$0xff]  ;;  %v359_v28 = vld [vmem:[#allocation5 + $0x48] sm:$0xff]  ;;  %v344_v42 = vld [vmem:[%s1861_s4 + $0x50] sm:$0xff] }
  0x51   : > { %454 = vmatpush.msra.mxu0 %v262_v53  ;;  %610 = vmatpush.msrb.mxu2 %v311_v1  ;;  %v333_v26 = vld [vmem:[%s1492_s9 + $0x238] sm:$0xff]  ;;  %v331_v31 = vld [vmem:[%s1492_s9 + $0x228] sm:$0xff]  ;;  %v372_v45 = vld [vmem:[#allocation5 + $0xb0] sm:$0xff] }
  0x52   : > { %455 = vmatmul.f32.vlgmr.msra.gmra.mxu0 %v1583_v55  ;;  %495 = vmatpush.msra.mxu1 %v1589_v57  ;;  %v329_v32 = vld [vmem:[%s1492_s9 + $0x218] sm:$0xff]  ;;  %v327_v33 = vld [vmem:[%s1492_s9 + $0x208] sm:$0xff]  ;;  %v804_v46 = vld [vmem:[%s1860_s3] sm:$0xff] }
  0x53   : > { %1106 = vmatmul.msk.f32.gmra.mxu2 %vm414_vm0, %v1585_v56  ;;  %496 = vmatmul.f32.vlgmr.msra.gmra.mxu1 %v1594_v59  ;;  %v373_v35 = vld [vmem:[#allocation5 + $0xb8] sm:$0xff]  ;;  %v363_v36 = vld [vmem:[#allocation5 + $0x68] sm:$0xff]  ;;  %v346_v49 = vld [vmem:[%s1861_s4 + $0x60] sm:$0xff] }
  0x54   : > { %571 = vmatpush.msra.mxu3 %v275_v4  ;;  %611 = vmatpush.msrb.mxu2 %v309_v5  ;;  %v365_v37 = vld [vmem:[#allocation5 + $0x78] sm:$0xff]  ;;  %v371_v44 = vld [vmem:[#allocation5 + $0xa8] sm:$0xff] }
  0x55   : > { %391 = vperm.xlu2 %1223, %v337_v11   ;;  %656 = vmatpush.msrb.mxu0 %v333_v26  ;;  %v369_v41 = vld [vmem:[#allocation5 + $0x98] sm:$0xff]  ;;  %v347_v53 = vld [vmem:[%s1861_s4 + $0x68] sm:$0xff] }
  0x56   : > { %572 = vmatpush.msra.mxu3 %v273_v7  ;;  %612 = vmatpush.msrb.mxu2 %v307_v8  ;;  %v807_v48 = vld [vmem:[%s1860_s3 + $0x18] sm:$0xff] }
  0x57   : > { %1149 = vmatpush.msrb.mxu1 %v333_v26  ;;  %657 = vmatpush.msrb.mxu0 %v331_v31  ;;  %v349_v50 = vld [vmem:[%s1861_s4 + $0x78] sm:$0xff] }
  0x58   : > { %573 = vmatpush.msra.mxu3 %v271_v9  ;;  %613 = vmatpush.msrb.mxu2 %v305_v10 }
  0x59   : > { %1150 = vmatpush.msrb.mxu1 %v331_v31  ;;  %658 = vmatpush.msrb.mxu0 %v329_v32 }
  0x5a   : > { %458 = vmatmul.f32.gmra.mxu0 %v1607_v2  ;;  %574 = vmatpush.msra.mxu3 %v269_v13 }
  0x5b   : > { %1107 = vmatmul.msk.f32.gmra.mxu2 %vm414_vm0, %v1609_v3  ;;  %499 = vmatmul.f32.gmra.mxu1 %v1613_v6 }
  0x5c   : > { %614 = vmatpush.msrb.mxu2 %v303_v14  ;;  %575 = vmatpush.msra.mxu3 %v267_v17 }
  0x5d   : > { %386 = vperm.xlu2 %1223, %v336_v25   ;;  %1151 = vmatpush.msrb.mxu1 %v329_v32 }
  0x5e   : > { %615 = vmatpush.msrb.mxu2 %v301_v18  ;;  %576 = vmatpush.msra.mxu3 %v265_v20 }
  0x5f   : > { %659 = vmatpush.msrb.mxu0 %v327_v33  ;;  %1152 = vmatpush.msrb.mxu1 %v327_v33 }
  0x60   : > { %616 = vmatpush.msrb.mxu2 %v299_v21  ;;  %577 = vmatpush.msra.mxu3 %v263_v23 }
  0x61   : > { %578 = vmatmul.f32.vlgmr.msra.gmra.mxu3 %v1583_v55  ;;  %935 = vmatpush.msra.mxu0 %v301_v18 }
  0x62   : > { %461 = vmatmul.f32.gmra.mxu0 %v356_v15  ;;  %617 = vmatpush.msrb.mxu2 %v297_v24 }
  0x63   : > { %1108 = vmatmul.msk.f32.gmra.mxu2 %vm414_vm0, %v1628_v16  ;;  %502 = vmatmul.f32.gmra.mxu1 %v1632_v19 }
  0x64   : > { %618 = vmatpush.msrb.mxu2 %v295_v27  ;;  %936 = vmatpush.msra.mxu0 %v299_v21 }
  0x65   : > { %717 = vperm.xlu0 %1221, %v344_v42  }
  0x66   : > { %906 = vmatpush.msra.mxu2 %v1560_v43  ;;  %937 = vmatpush.msra.mxu0 %v297_v24  ;;  %v343_v43 = vld [vmem:[%s1861_s4 + $0x48] sm:$0xff] }
  0x67   : > { %712 = vperm.xlu1 %1222, %v343_v43  }
  0x68   : > { %907 = vmatpush.msra.mxu2 %v1570_v47  ;;  %938 = vmatpush.msra.mxu0 %v295_v27  ;;  %v805_v47 = vld [vmem:[%s1860_s3 + $0x8] sm:$0xff] }
  0x69   : > { %581 = vmatmul.f32.gmra.mxu3 %v1607_v2 }
  0x6a   : > { %464 = vmatmul.f32.gmra.mxu0 %v359_v28  ;;  %908 = vmatpush.msra.mxu2 %v1577_v51  ;;  %v342_v51 = vld [vmem:[%s1861_s4 + $0x40] sm:$0xff] }
  0x6b   : > { %1109 = vmatmul.msk.f32.gmra.mxu2 %vm414_vm0, %v1646_v29  ;;  %505 = vmatmul.f32.gmra.mxu1 %v360_v30 }
  0x6c   : > { %909 = vmatpush.msra.mxu2 %v1589_v57 }
  0x6d   : > { %812 = vrot.lane.b32.xlu0 %v804_v46, %s1362_s10 }
  0x6f   : > { %814 = vrot.lane.b32.xlu1 %v805_v47, %s1362_s10 }
  0x71   : > { %584 = vmatmul.f32.gmra.mxu3 %v356_v15 }
  0x72   : > { %467 = vmatmul.f32.gmra.mxu0 %v362_v34 }
  0x73   : > { %1110 = vmatmul.msk.f32.gmra.mxu2 %vm414_vm0, %v373_v35  ;;  %508 = vmatmul.f32.gmra.mxu1 %v363_v36 }
  0x75   : > { %818 = vrot.lane.b32.xlu0 %v807_v48, %s1362_s10 }
  0x77   : > { %954 = vperm.xlu1 %1222, %v346_v49  }
  0x79   : > { %587 = vmatmul.f32.gmra.mxu3 %v359_v28 }
  0x7a   : > { %470 = vmatmul.f32.gmra.mxu0 %v365_v37 }
  0x7b   : > { %619 = vmatmul.f32.vlgmr.msrb.gmra.mxu2 %v1594_v59  ;;  %511 = vmatmul.f32.gmra.mxu1 %v366_v38 }
  0x7f   : > { %969 = vperm.xlu1 %1222, %v349_v50  }
  0x81   : > { %590 = vmatmul.f32.gmra.mxu3 %v362_v34 }
  0x82   : > { %473 = vmatmul.f32.gmra.mxu0 %v368_v40 }
  0x83   : > { %622 = vmatmul.f32.gmra.mxu2 %v1613_v6  ;;  %514 = vmatmul.f32.gmra.mxu1 %v369_v41 }
  0x89   : > { %593 = vmatmul.f32.gmra.mxu3 %v365_v37 }
  0x8a   : > { %476 = vmatmul.f32.gmra.mxu0 %v371_v44 }
  0x8b   : > { %625 = vmatmul.f32.gmra.mxu2 %v1632_v19  ;;  %517 = vmatmul.f32.gmra.mxu1 %v372_v45 }
  0x91   : > { %596 = vmatmul.f32.gmra.mxu3 %v368_v40 }
  0x92   : > { %1111 = vmatmul.msk.f32.vlgmr.msrb.gmra.mxu0 %vm414_vm0, %v1513_v12  ;;  %v348_v12 = vld [vmem:[%s1861_s4 + $0x70] sm:$0xff] }
  0x93   : > { %628 = vmatmul.f32.gmra.mxu2 %v360_v30  ;;  %1117 = vmatmul.msk.f32.vlgmr.msrb.gmra.mxu1 %vm414_vm0, %v1646_v29 }
  0x94   : > { %964 = vperm.xlu0 %1221, %v348_v12  }
  0x99   : > { %599 = vmatmul.f32.gmra.mxu3 %v371_v44 }
  0x9a   : > { %1112 = vmatmul.msk.f32.gmra.mxu0 %vm414_vm0, %v1528_v22  ;;  %v345_v22 = vld [vmem:[%s1861_s4 + $0x58] sm:$0xff] }
  0x9b   : > { %631 = vmatmul.f32.gmra.mxu2 %v363_v36  ;;  %1118 = vmatmul.msk.f32.gmra.mxu1 %vm414_vm0, %v373_v35 }
  0x9c   : > { %722 = vperm.xlu2 %1223, %v345_v22  }
  0xa2   : > { %1113 = vmatmul.msk.f32.gmra.mxu0 %vm414_vm0, %v1554_v39  ;;  %v806_v39 = vld [vmem:[%s1860_s3 + $0x10] sm:$0xff] }
  0xa3   : > { %634 = vmatmul.f32.gmra.mxu2 %v366_v38 }
  0xa4   : > { %707 = vperm.xlu2 %1223, %v342_v51  }
  0xa7   : > { %v1713_v52 = vpop.permute.xlu1 %401 }
  0xaa   : > { %1114 = vmatmul.msk.f32.gmra.mxu0 %vm414_vm0, %v1585_v56 }
  0xab   : > { %637 = vmatmul.f32.gmra.mxu2 %v369_v41 }
  0xac   : > { %816 = vrot.lane.b32.xlu2 %v806_v39, %s1362_s10  ;;  %s997_s10 = scalar_lea.sflag [#allocation4], %s1488_s26 }
  0xaf   : > { %v1723_v55 = vpop.permute.xlu1 %396  ;;  %v1740_v21 = vpop.permute.xlu2 %391 }
  0xb2   : > { %1115 = vmatmul.msk.f32.gmra.mxu0 %vm414_vm0, %v1609_v3 }
  0xb3   : > { %640 = vmatmul.f32.gmra.mxu2 %v372_v45 }
  0xb4   : > { %959 = vperm.xlu2 %1223, %v347_v53  }
  0xb7   : > { %v377_v58 = vpop.permute.xlu1 %376  ;;  %v1752_v32 = vpop.permute.xlu2 %386 }
  0xba   : > { %1116 = vmatmul.msk.f32.gmra.mxu0 %vm414_vm0, %v1628_v16  ;;  %v1738_v16 = vpop.permute.xlu0 %411 }
  0xbb   : > { %1135 = vmatmul.msk.f32.vlgmr.msra.gmra.mxu2 %vm414_vm0, %v804_v46 }
  0xbe   : > { %v538_v54 = vpop.f32.mrf.mxu2 }
  0xc2   : > { %1139 = vmatmul.msk.f32.vlgmr.msra.gmra.mxu0 %vm414_vm0, %v804_v46  ;;  %v1746_v26 = vpop.permute.xlu0 %406 }
  0xc3   : > { %1136 = vmatmul.msk.f32.gmra.mxu2 %vm414_vm0, %v805_v47 }
  0xc6   : > { %v1725_v56 = vpop.f32.mrf.mxu2 }
  0xca   : > { %1140 = vmatmul.msk.f32.gmra.mxu0 %vm414_vm0, %v805_v47  ;;  %v1759_v42 = vpop.permute.xlu0 %381 }
  0xcb   : > { %1137 = vmatmul.msk.f32.gmra.mxu2 %vm414_vm0, %v806_v39 }
  0xce   : > { %v1729_v57 = vpop.f32.mrf.mxu2 }
  0xcf   : > { %v456_v59 = vpop.f32.mrf.mxu0 }
  0xd0   : > { %v457_v60 = vadd.f32 %v456_v59, %v377_v58  ;;  %v497_v61 = vpop.f32.mrf.mxu1 }
  0xd2   : > { %v498_v62 = vadd.f32 %v497_v61, %v457_v60  ;;  %1141 = vmatmul.msk.f32.gmra.mxu0 %vm414_vm0, %v806_v39 }
  0xd3   : > { %1138 = vmatmul.msk.f32.gmra.mxu2 %vm414_vm0, %v807_v48 }
  0xd4   : > { %v1733_v63 = vadd.f32 %v538_v54, %v498_v62 }
  0xd6   : > { %v547_v0 = vpop.f32.mrf.mxu2 }
  0xd7   : > { %v459_v1 = vpop.f32.mrf.mxu0 }
  0xd8   : > { %v500_v2 = vpop.f32.mrf.mxu1 }
  0xda   : > { %1142 = vmatmul.msk.f32.gmra.mxu0 %vm414_vm0, %v807_v48  ;;  %v460_v48 = vadd.f32 %v459_v1, %v1759_v42 }
  0xdc   : > { %v501_v54 = vadd.f32 %v500_v2, %v460_v48  ;;  %v685_v2 = vmax.f32 %v1733_v63, 0.0 }
  0xde   : > { %v550_v3 = vpop.f32.mrf.mxu2  ;;  %v542_v1 = vadd.f32 %v1725_v56, %v501_v54  ;;  %v702_v56 = vld [vmem:[%s1859_s2 + $0x8] sm:$0xff] }
  0xdf   : > { %v462_v4 = vpop.f32.mrf.mxu0 }
  0xe0   : > { %v503_v5 = vpop.f32.mrf.mxu1  ;;  %v463_v43 = vadd.f32 %v462_v4, %v1752_v32 }
  0xe2   : > { %v504_v51 = vadd.f32 %v503_v5, %v463_v43 }
  0xe4   : > { %v579_v9 = vpop.f32.mrf.mxu3  ;;  %v545_v61 = vadd.f32 %v1729_v57, %v504_v51 }
  0xe5   : > { %v580_v19 = vadd.f32 %v579_v9, %v377_v58 }
  0xe6   : > { %v553_v6 = vpop.f32.mrf.mxu2 }
  0xe7   : > { %v465_v7 = vpop.f32.mrf.mxu0 }
  0xe8   : > { %v506_v8 = vpop.f32.mrf.mxu1  ;;  %v466_v38 = vadd.f32 %v465_v7, %v1740_v21 }
  0xea   : > { %v507_v49 = vadd.f32 %v506_v8, %v466_v38  ;;  %v689_v8 = vmax.f32 %v545_v61, 0.0  ;;  %v713_v61 = vpop.permute.xlu1 %712 }
  0xec   : > { %v1736_v15 = vpop.f32.mrf.mxu3  ;;  %v548_v58 = vadd.f32 %v547_v0, %v507_v49  ;;  %v701_v0 = vld [vmem:[%s1859_s2] sm:$0xff] }
  0xee   : > { %v556_v10 = vpop.f32.mrf.mxu2 }
  0xef   : > { %v468_v11 = vpop.f32.mrf.mxu0 }
  0xf0   : > { %v509_v13 = vpop.f32.mrf.mxu1  ;;  %v469_v33 = vadd.f32 %v468_v11, %v1723_v55 }
  0xf2   : > { %v510_v44 = vadd.f32 %v509_v13, %v469_v33 }
  0xf4   : > { %v1744_v25 = vpop.f32.mrf.mxu3  ;;  %v551_v39 = vadd.f32 %v550_v3, %v510_v44  ;;  %v687_v3 = vmax.f32 %v542_v1, 0.0 }
  0xf6   : > { %v559_v14 = vpop.f32.mrf.mxu2  ;;  %v693_v62 = vmax.f32 %v551_v39, 0.0 }
  0xf7   : > { %v471_v17 = vpop.f32.mrf.mxu0 }
  0xf8   : > { %v512_v18 = vpop.f32.mrf.mxu1  ;;  %v472_v30 = vadd.f32 %v471_v17, %v1713_v52 }
  0xfa   : > { %v513_v40 = vadd.f32 %v512_v18, %v472_v30  ;;  %v704_v30 = vld [vmem:[%s1859_s2 + $0x18] sm:$0xff] }
  0xfc   : > { %v1756_v37 = vpop.f32.mrf.mxu3  ;;  %v554_v12 = vadd.f32 %v553_v6, %v513_v40  ;;  %v691_v6 = vmax.f32 %v548_v58, 0.0  ;;  %v723_v58 = vpop.permute.xlu2 %722 }
  0xfe   : > { %v620_v20 = vpop.f32.mrf.mxu2  ;;  %v695_v59 = vmax.f32 %v554_v12, 0.0 }
  0xff   : > { %v1742_v23 = vadd.f32 %v620_v20, %v580_v19  ;;  %v474_v24 = vpop.f32.mrf.mxu0 }
 0x100   : > { %v515_v27 = vpop.f32.mrf.mxu1  ;;  %v475_v28 = vadd.f32 %v474_v24, %v1746_v26 }
 0x102   : > { %v516_v34 = vadd.f32 %v515_v27, %v475_v28 }
 0x104   : > { %v557_v45 = vadd.f32 %v556_v10, %v516_v34  ;;  %v591_v60 = vpop.f32.mrf.mxu3  ;;  %v708_v1 = vpop.permute.xlu2 %707 }
 0x105   : > { %v592_v34 = vadd.f32 %v591_v60, %v1723_v55 }
 0x106   : > { %v1749_v29 = vpop.f32.mrf.mxu2  ;;  %v697_v53 = vmax.f32 %v557_v45, 0.0  ;;  %v583_v45 = vadd.f32 %v1736_v15, %v1759_v42 }
 0x107   : > { %v477_v31 = vpop.f32.mrf.mxu0 }
 0x108   : > { %v478_v35 = vadd.f32 %v477_v31, %v1738_v16  ;;  %v518_v36 = vpop.f32.mrf.mxu1 }
 0x10a   : > { %v519_v41 = vadd.f32 %v518_v36, %v478_v35 }
 0x10c   : > { %v560_v46 = vadd.f32 %v559_v14, %v519_v41  ;;  %v594_v5 = vpop.f32.mrf.mxu3  ;;  %v703_v14 = vld [vmem:[%s1859_s2 + $0x10] sm:$0xff] }
 0x10d   : > { %v595_v24 = vadd.f32 %v594_v5, %v1713_v52  ;;  %v817_v5 = vpop.permute.xlu2 %816 }
 0x10e   : > { %v1762_v47 = vpop.f32.mrf.mxu2  ;;  %v699_v50 = vmax.f32 %v560_v46, 0.0 }
 0x10f   : > { %v1765_v22 = vpop.f32.mrf.mxu0 }
 0x110   : > { %746 = vmatpush.msra.mxu1 %v699_v50  ;;  %v679_v13 = vpop.f32.mrf.mxu1  ;;  %v662_v15 = vadd.f32 %v1765_v22, %v1742_v23  ;;  %v718_v23 = vpop.permute.xlu0 %717 }
 0x112   : > { %747 = vmatpush.msra.mxu1 %v697_v53  ;;  %v686_v53 = vmax.f32 %v662_v15, 0.0 }
 0x114   : > { %748 = vmatpush.msra.mxu1 %v695_v59  ;;  %v597_v63 = vpop.f32.mrf.mxu3 }
 0x115   : > { %v598_v19 = vadd.f32 %v597_v63, %v1746_v26  ;;  %v589_v26 = vadd.f32 %v1756_v37, %v1740_v21  ;;  %v624_v37 = vadd.f32 %v1749_v29, %v583_v45 }
 0x116   : > { %v629_v4 = vpop.f32.mrf.mxu2  ;;  %749 = vmatpush.msra.mxu1 %v693_v62 }
 0x117   : > { %v664_v7 = vpop.f32.mrf.mxu0  ;;  %v630_v55 = vadd.f32 %v629_v4, %v589_v26 }
 0x118   : > { %750 = vmatpush.msra.mxu1 %v691_v6  ;;  %v682_v33 = vpop.f32.mrf.mxu1 }
 0x11a   : > { %751 = vmatpush.msra.mxu1 %v689_v8 }
 0x11c   : > { %752 = vmatpush.msra.mxu1 %v687_v3  ;;  %v600_v20 = vpop.f32.mrf.mxu3 }
 0x11d   : > { %v601_v28 = vadd.f32 %v600_v20, %v1738_v16  ;;  %v586_v16 = vadd.f32 %v1744_v25, %v1752_v32  ;;  %v665_v25 = vadd.f32 %v664_v7, %v624_v37 }
 0x11e   : > { %v632_v57 = vpop.f32.mrf.mxu2  ;;  %753 = vmatpush.msra.mxu1 %v685_v2  ;;  %v813_v2 = vpop.permute.xlu0 %812 }
 0x11f   : > { %v667_v9 = vpop.f32.mrf.mxu0  ;;  %1119 = vmatmul.msk.f32.vlgmr.msra.gmra.mxu1 %vm725_vm1, %v701_v0  ;;  %v633_v41 = vadd.f32 %v632_v57, %v592_v34  ;;  %v627_v49 = vadd.f32 %v1762_v47, %v586_v16  ;;  %v688_v39 = vmax.f32 %v665_v25, 0.0 }
 0x121   : > { %v668_v50 = vadd.f32 %v667_v9, %v627_v49 }
 0x123   : > { %v690_v42 = vmax.f32 %v668_v50, 0.0 }
 0x126   : > { %v635_v10 = vpop.f32.mrf.mxu2 }
 0x127   : > { %v670_v11 = vpop.f32.mrf.mxu0  ;;  %1120 = vmatmul.msk.f32.gmra.mxu1 %vm725_vm1, %v702_v56  ;;  %v636_v38 = vadd.f32 %v635_v10, %v595_v24 }
 0x128   : > { %v671_v12 = vadd.f32 %v670_v11, %v630_v55 }
 0x12a   : > { %v692_v32 = vmax.f32 %v671_v12, 0.0 }
 0x12e   : > { %v638_v17 = vpop.f32.mrf.mxu2 }
 0x12f   : > { %v673_v18 = vpop.f32.mrf.mxu0  ;;  %1121 = vmatmul.msk.f32.gmra.mxu1 %vm725_vm1, %v703_v14  ;;  %v639_v27 = vadd.f32 %v638_v17, %v598_v19 }
 0x130   : > { %v674_v46 = vadd.f32 %v673_v18, %v633_v41 }
 0x131   : > { %v680_v52 = vadd.f32 %v679_v13, %v639_v27 }
 0x132   : > { %v694_v51 = vmax.f32 %v674_v46, 0.0 }
 0x133   : > { %v698_v48 = vmax.f32 %v680_v52, 0.0 }
 0x136   : > { %v641_v31 = vpop.f32.mrf.mxu2 }
 0x137   : > { %v642_v35 = vadd.f32 %v641_v31, %v601_v28  ;;  %v676_v36 = vpop.f32.mrf.mxu0  ;;  %1122 = vmatmul.msk.f32.gmra.mxu1 %vm725_vm1, %v704_v30 }
 0x138   : > { %v677_v43 = vadd.f32 %v676_v36, %v636_v38  ;;  %v960_v38 = vpop.permute.xlu2 %959 }
 0x139   : > { %v683_v40 = vadd.f32 %v682_v33, %v642_v35 }
 0x13a   : > { %v696_v21 = vmax.f32 %v677_v43, 0.0 }
 0x13b   : > { %v700_v44 = vmax.f32 %v683_v40, 0.0 }
 0x13d   : > { %775 = vmatpush.msrb.mxu3 %v700_v44 }
 0x13e   : > { %v911_v27 = vpop.f32.mrf.mxu2 }
 0x13f   : > { %776 = vmatpush.msrb.mxu3 %v698_v48  ;;  %v940_v50 = vpop.f32.mrf.mxu0 }
 0x141   : > { %777 = vmatpush.msrb.mxu3 %v696_v21 }
 0x143   : > { %778 = vmatpush.msrb.mxu3 %v694_v51 }
 0x145   : > { %779 = vmatpush.msrb.mxu3 %v692_v32 }
 0x146   : > { %v914_v33 = vpop.f32.mrf.mxu2 }
 0x147   : > { %780 = vmatpush.msrb.mxu3 %v690_v42  ;;  %v943_v32 = vpop.f32.mrf.mxu0 }
 0x149   : > { %781 = vmatpush.msrb.mxu3 %v688_v39 }
 0x14b   : > { %782 = vmatpush.msrb.mxu3 %v686_v53 }
 0x14c   : > { %1123 = vmatmul.msk.f32.vlgmr.msrb.gmra.mxu3 %vm725_vm1, %v701_v0  ;;  %v815_v0 = vpop.permute.xlu1 %814 }
 0x14e   : > { %v917_v40 = vpop.f32.mrf.mxu2 }
 0x154   : > { %1124 = vmatmul.msk.f32.gmra.mxu3 %vm725_vm1, %v702_v56  ;;  %v819_v56 = vpop.permute.xlu0 %818  ;;  %v955_v31 = vpop.permute.xlu1 %954 }
 0x156   : > { %v920_v46 = vpop.f32.mrf.mxu2 }
 0x15c   : > { %1125 = vmatmul.msk.f32.gmra.mxu3 %vm725_vm1, %v703_v14  ;;  %v965_v44 = vpop.permute.xlu0 %964  ;;  %v970_v12 = vpop.permute.xlu1 %969 }
 0x164   : > { %1126 = vmatmul.msk.f32.gmra.mxu3 %vm725_vm1, %v704_v30 }
 0x19c   : > { %v755_v29 = vpop.f32.mrf.mxu1 }
 0x19d   : > { %v756_v6 = vadd.f32 %v755_v29, %v708_v1 }
 0x19f   : > { %v796_v3 = vmax.f32 %v756_v6, 0.0 }
 0x1a4   : > { %v758_v47 = vpop.f32.mrf.mxu1 }
 0x1a5   : > { %v759_v62 = vadd.f32 %v758_v47, %v713_v61  ;;  %v946_v47 = vpop.f32.mrf.mxu0 }
 0x1a7   : > { %v798_v8 = vmax.f32 %v759_v62, 0.0 }
 0x1ac   : > { %v761_v54 = vpop.f32.mrf.mxu1 }
 0x1ad   : > { %v762_v59 = vadd.f32 %v761_v54, %v718_v23 }
 0x1af   : > { %v800_v7 = vmax.f32 %v762_v59, 0.0 }
 0x1b4   : > { %v764_v22 = vpop.f32.mrf.mxu1 }
 0x1b5   : > { %v765_v60 = vadd.f32 %v764_v22, %v723_v58 }
 0x1b7   : > { %v802_v4 = vmax.f32 %v765_v60, 0.0  ;;  %v949_v60 = vpop.f32.mrf.mxu0 }
 0x1b9   : > { %840 = vmatpush.msrb.mxu1 %v802_v4 }
 0x1bb   : > { %841 = vmatpush.msrb.mxu1 %v800_v7 }
 0x1bd   : > { %842 = vmatpush.msrb.mxu1 %v798_v8 }
 0x1bf   : > { %843 = vmatpush.msrb.mxu1 %v796_v3 }
 0x1c0   : > { %1127 = vmatmul.msk.f32.vlgmr.msrb.gmra.mxu1 %vm414_vm0, %v813_v2 }
 0x1c8   : > { %1128 = vmatmul.msk.f32.gmra.mxu1 %vm414_vm0, %v815_v0 }
 0x1cf   : > { %v784_v57 = vpop.f32.mrf.mxu3 }
 0x1d0   : > { %1129 = vmatmul.msk.f32.gmra.mxu1 %vm414_vm0, %v817_v5  ;;  %v785_v18 = vadd.f32 %v784_v57, %v708_v1 }
 0x1d2   : > { %v797_v24 = vmax.f32 %v785_v18, 0.0 }
 0x1d7   : > { %v787_v9 = vpop.f32.mrf.mxu3 }
 0x1d8   : > { %1130 = vmatmul.msk.f32.gmra.mxu1 %vm414_vm0, %v819_v56  ;;  %v788_v14 = vadd.f32 %v787_v9, %v713_v61 }
 0x1da   : > { %v799_v20 = vmax.f32 %v788_v14, 0.0 }
 0x1df   : > { %v790_v10 = vpop.f32.mrf.mxu3 }
 0x1e0   : > { %v791_v63 = vadd.f32 %v790_v10, %v718_v23 }
 0x1e2   : > { %v801_v19 = vmax.f32 %v791_v63, 0.0 }
 0x1e7   : > { %v793_v11 = vpop.f32.mrf.mxu3 }
 0x1e8   : > { %v794_v13 = vadd.f32 %v793_v11, %v723_v58 }
 0x1ea   : > { %v803_v17 = vmax.f32 %v794_v13, 0.0 }
 0x1ec   : > { %869 = vmatpush.msra.mxu3 %v803_v17 }
 0x1ee   : > { %870 = vmatpush.msra.mxu3 %v801_v19 }
 0x1f0   : > { %871 = vmatpush.msra.mxu3 %v799_v20 }
 0x1f2   : > { %872 = vmatpush.msra.mxu3 %v797_v24 }
 0x1f3   : > { %1131 = vmatmul.msk.f32.vlgmr.msra.gmra.mxu3 %vm414_vm0, %v813_v2 }
 0x1fb   : > { %1132 = vmatmul.msk.f32.gmra.mxu3 %vm414_vm0, %v815_v0 }
 0x203   : > { %1133 = vmatmul.msk.f32.gmra.mxu3 %vm414_vm0, %v817_v5 }
 0x20b   : > { %1134 = vmatmul.msk.f32.gmra.mxu3 %vm414_vm0, %v819_v56 }
 0x23d   : > { %v845_v28 = vpop.f32.mrf.mxu1 }
 0x23e   : > { %v912_v30 = vadd.f32 %v911_v27, %v845_v28 }
 0x240   : > { %v972_v34 = vadd.f32 %v955_v31, %v912_v30 }
 0x242   : > { %v980_v35 = vmax.f32 %v972_v34, 0.0 }
 0x244   : > { %988 = vst [vmem:[%s1813_s27] sm:$0xff] %v980_v35 }
 0x245   : > { %v848_v36 = vpop.f32.mrf.mxu1 }
 0x246   : > { %v915_v26 = vadd.f32 %v914_v33, %v848_v36 }
 0x248   : > { %v974_v52 = vadd.f32 %v960_v38, %v915_v26 }
 0x24a   : > { %v982_v16 = vmax.f32 %v974_v52, 0.0 }
 0x24c   : > { %990 = vst [vmem:[%s1813_s27 + $0x10] sm:$0xff] %v982_v16 }
 0x24d   : > { %v851_v41 = vpop.f32.mrf.mxu1 }
 0x24e   : > { %v918_v43 = vadd.f32 %v917_v40, %v851_v41 }
 0x250   : > { %v976_v45 = vadd.f32 %v965_v44, %v918_v43 }
 0x252   : > { %v984_v55 = vmax.f32 %v976_v45, 0.0 }
 0x254   : > { %992 = vst [vmem:[%s1813_s27 + $0x20] sm:$0xff] %v984_v55 }
 0x255   : > { %v854_v48 = vpop.f32.mrf.mxu1 }
 0x256   : > { %v921_v49 = vadd.f32 %v920_v46, %v854_v48 }
 0x258   : > { %v978_v21 = vadd.f32 %v970_v12, %v921_v49 }
 0x25a   : > { %v986_v37 = vmax.f32 %v978_v21, 0.0 }
 0x25c   : > { %994 = vst [vmem:[%s1813_s27 + $0x30] sm:$0xff] %v986_v37 }
 0x276   : > { %v874_v51 = vpop.f32.mrf.mxu3 }
 0x277   : > { %v941_v25 = vadd.f32 %v940_v50, %v874_v51 }
 0x279   : > { %v973_v15 = vadd.f32 %v955_v31, %v941_v25 }
 0x27b   : > { %v981_v42 = vmax.f32 %v973_v15, 0.0 }
 0x27d   : > { %989 = vst [vmem:[%s1813_s27 + $0x8] sm:$0xff] %v981_v42 }
 0x27e   : > { %v877_v39 = vpop.f32.mrf.mxu3 }
 0x27f   : > { %v944_v53 = vadd.f32 %v943_v32, %v877_v39 }
 0x281   : > { %v975_v29 = vadd.f32 %v960_v38, %v944_v53 }
 0x283   : > { %v983_v54 = vmax.f32 %v975_v29, 0.0 }
 0x285   : > { %991 = vst [vmem:[%s1813_s27 + $0x18] sm:$0xff] %v983_v54 }
 0x286   : > { %v880_v58 = vpop.f32.mrf.mxu3 }
 0x287   : > { %v947_v23 = vadd.f32 %v946_v47, %v880_v58 }
 0x289   : > { %v977_v22 = vadd.f32 %v965_v44, %v947_v23 }
 0x28b   : > { %v985_v59 = vmax.f32 %v977_v22, 0.0 }
 0x28d   : > { %993 = vst [vmem:[%s1813_s27 + $0x28] sm:$0xff] %v985_v59 }
 0x28e   : > { %v883_v61 = vpop.f32.mrf.mxu3 }
 0x28f   : > { %v950_v62 = vadd.f32 %v949_v60, %v883_v61 }
 0x291   : > { %v979_v4 = vadd.f32 %v970_v12, %v950_v62 }
 0x293   : > { %v987_v1 = vmax.f32 %v979_v4, 0.0 }
 0x295   : > { %995 = vst [vmem:[%s1813_s27 + $0x38] sm:$0xff] %v987_v1 }
 0x296   : > { %1311 = shalt.err (!%p1308_p10)
}
 0x297   : > { %s1363_s26 = smov 256   ;;  %s1364_s9 = smov 16  }
 0x298   : > { %1162 = dma.vmem_to_hbm [thread:$0]  (%p1462_p7), %s1010_s15, 1024, %s1012_s17, %s997_s10, %s1363_s26, %s1363_s26, %s1364_s9  }
 0x299 PF: > { %s1026_s29 = sand.u32 1, %s1342_s18   ;;  %p1870_p12 = scmp.ge.s32.totalorder %s1354_s21, 2 }
 0x29a   : > { %s1027_s27 = scalar_lea.sflag [#allocation4], %s1026_s29 }
 0x29b   : > { %p1173_p13 = pnand %p1870_p12, %p1430_p6 }
 0x29d   : > { %p1174_p0 = pneg %p1173_p13 }
 0x29f   : > { %1337 = dma.done.wait (%p1174_p0), %s1027_s27, 1024  }
 0x2a0   : > { %1339 = vsyncadd (%p1174_p0), %s1027_s27, 4294966272  ;;  %p19_p3 = scmp.ge.s32.totalorder %s1448_s7, 4   ;;  %s1871_s18 = smov %s1346_s19 }
 0x2a1   : > { %s1872_s19 = smov %s1350_s20  ;;  %s1873_s20 = smov %s1458_s12 }
 0x2a2   : > { %s1874_s21 = smov %s1448_s7  ;;  %21 = sbr.rel (!%p19_p3) target bundleno = 8 (0x8), region = 89 }
 0x2a7   :  { %1033 = vsyncpa [#allocation3], 1 }
 0x2a8   :  { %1035 = vsyncpa [#allocation3 + $0x1], 1 }
 0x2a9   :  { %1036 = vsyncpa [#allocation6], 1 }
 0x2aa   :  { %1037 = vsyncpa [#allocation4], 1 }
 0x2ab   :  { %1039 = vsyncpa [#allocation4 + $0x1], 1 }

</bundles_post_ra>
